<compile_context>
chip_gen: v7x
topology: tpu7x:2x2x1
jax: 0.10.0
libtpu: 0.0.40
codegen_flags: <defaults>
</compile_context>

<pallas_src>
import functools

import jax
import jax.numpy as jnp
from jax import lax
from jax.experimental import pallas as pl
from jax.experimental.pallas import tpu as pltpu

LANE = 128   # lane-dense slab / padded classifier width
B_BLK = 8    # batch rows per grid step (one f32 sublane tile)


def _round_up(x, m):
    return (x + m - 1) // m * m


# ---------------------------------------------------------------------------
# Fused forward kernel (one batch block of B_BLK rows per grid step)
#   ids0_ref: (B_BLK, S)    int32, batch-major  -> AverageEncoder tokens
#   ids1_ref: (S, B_BLK, 1) int32, time-major   -> RecurrentEncoder tokens
#   emb_ref : bf16 slab  [emb_avg ; emb_rnn ; W_ih]
#   par_ref : f32 slab   [W_hh ; W1 ; W2_pad ; b_rnn ; b1 ; b2_pad]
# ---------------------------------------------------------------------------
def _fused_forward_kernel(S, lt,
                          ids0_ref, ids1_ref, emb_ref, par_ref,
                          out_ref, cat_ref):
    V = lt["v_pad"]
    E_AVG, E_RNN, H_RNN = lt["e_avg"], lt["e_rnn"], lt["h_rnn"]
    LIN, NC = lt["lin_hid"], lt["n_cls"]
    B = B_BLK

    # ---- AverageEncoder: VPU count accumulation (no pool matmul) -----------
    ids0 = ids0_ref[...]                                       # (B, S)
    viota = lax.broadcasted_iota(jnp.int32, (B, V), 1)
    counts = jnp.zeros((B, V), jnp.float32)
    for s in range(S):                                         # S static, unrolled
        counts = counts + (ids0[:, s:s + 1] == viota).astype(jnp.float32)
    counts = (counts * jnp.float32(1.0 / S)).astype(jnp.bfloat16)   # k/S exact in bf16
    emb_avg = emb_ref[0:V, 0:E_AVG]                            # bf16 table
    h_avg = jnp.dot(counts, emb_avg,
                    preferred_element_type=jnp.float32)        # (B, E_AVG) f32

    # ---- RecurrentEncoder: bf16 one-hot gather + hoisted input projection --
    oiota = lax.broadcasted_iota(jnp.int32, (S, B, V), 2)
    onehot1 = ((ids1_ref[...] == oiota)
               .astype(jnp.float32).reshape(S * B, V)
               .astype(jnp.bfloat16))                          # (S*B, V) time-major
    emb_rnn = emb_ref[V:2 * V, 0:E_RNN]                        # bf16 table
    w_ih = emb_ref[2 * V:2 * V + E_RNN, 0:H_RNN]               # bf16
    emb1 = jnp.dot(onehot1, emb_rnn,
                   preferred_element_type=jnp.float32).astype(jnp.bfloat16)  # exact
    b_rnn = par_ref[lt["r_brnn"]:lt["r_brnn"] + 1, 0:H_RNN]
    z = jnp.dot(emb1, w_ih, preferred_element_type=jnp.float32) + b_rnn      # (S*B, H)

    # Serial recurrence kept in f32 (accuracy on the critical chain).
    w_hh = par_ref[lt["r_whh"]:lt["r_whh"] + H_RNN, 0:H_RNN]
    h = jnp.tanh(z[0:B, :])                                    # h_0 (prev hidden == 0)
    for t in range(1, S):                                      # static unroll
        h = jnp.tanh(z[t * B:(t + 1) * B, :]
                     + jnp.dot(h, w_hh, preferred_element_type=jnp.float32))

    # ---- Linear stack: fused concat via VMEM scratch -> one W1 push --------
    cat_ref[:, 0:E_AVG] = h_avg
    cat_ref[:, E_AVG:E_AVG + H_RNN] = h
    w1 = par_ref[lt["r_w1"]:lt["r_w1"] + E_AVG + H_RNN, 0:LIN]
    b1 = par_ref[lt["r_b1"]:lt["r_b1"] + 1, 0:LIN]
    z1 = jnp.dot(cat_ref[...], w1, preferred_element_type=jnp.float32) + b1  # (B, LIN)
    w2 = par_ref[lt["r_w2"]:lt["r_w2"] + LIN, :]               # (LIN, 128), pad cols 0
    b2 = par_ref[lt["r_b2"]:lt["r_b2"] + 1, :]
    z2 = jnp.dot(z1, w2, preferred_element_type=jnp.float32) + b2            # (B, 128)

    # ---- lane-masked log-softmax over the first NC columns -----------------
    col = lax.broadcasted_iota(jnp.int32, z2.shape, 1)
    valid = col < NC
    zm = jnp.where(valid, z2, jnp.float32(-1e30))
    m = jnp.max(zm, axis=1, keepdims=True)
    ssum = jnp.sum(jnp.where(valid, jnp.exp(z2 - m), jnp.float32(0.0)),
                   axis=1, keepdims=True)
    out_ref[...] = z2 - (m + jnp.log(ssum))


# ---------------------------------------------------------------------------
# Wrapper (Model.forward equivalent)
# ---------------------------------------------------------------------------
def model_forward(X0, X1, emb_slab, par_slab, *, layout, num_classes):
    B, S = X0.shape
    assert B % B_BLK == 0, "batch must be a multiple of 8 (sublane tile)"
    X0 = X0.astype(jnp.int32)
    X1t = X1.T.astype(jnp.int32)[:, :, None]        # (S, B, 1) time-major (tiny op)

    kernel = functools.partial(_fused_forward_kernel, S, layout)
    out_padded = pl.pallas_call(
        kernel,
        out_shape=jax.ShapeDtypeStruct((B, LANE), jnp.float32),
        grid_spec=pltpu.PrefetchScalarGridSpec(
            num_scalar_prefetch=0,
            grid=(B // B_BLK,),
            in_specs=[
                pl.BlockSpec((B_BLK, S), lambda i: (i, 0)),
                pl.BlockSpec((S, B_BLK, 1), lambda i: (0, i, 0)),
                pl.BlockSpec(emb_slab.shape, lambda i: (0, 0)),
                pl.BlockSpec(par_slab.shape, lambda i: (0, 0)),
            ],
            out_specs=pl.BlockSpec((B_BLK, LANE), lambda i: (i, 0)),
            scratch_shapes=[pltpu.VMEM(
                (B_BLK, layout["e_avg"] + layout["h_rnn"]), jnp.float32)],
        ),
        compiler_params=pltpu.CompilerParams(
            dimension_semantics=("parallel",)),
    )(X0, X1t, emb_slab, par_slab)
    return out_padded[:, :num_classes]


def prepare_params(p, dims):
    """Pack parameters into two lane-dense slabs + static row-offset layout.

    Slab 0 (bf16): [emb_avg ; emb_rnn ; W_ih] stacked along rows (gather path).
    Slab 1 (f32) : [W_hh ; W1 ; W2_pad ; b_rnn ; b1 ; b2_pad] at 8-aligned rows.
    nn.RNN's two biases (b_ih, b_hh) are summed here (single combined bias).
    """
    V, E_AVG, E_RNN = dims["vocab"], dims["e_avg"], dims["e_rnn"]
    H_RNN, LIN, NC = dims["h_rnn"], dims["lin_hid"], dims["n_cls"]
    V_PAD = _round_up(V, 16)                         # bf16 sublane tile = 16 rows

    emb_rows = 2 * V_PAD + _round_up(E_RNN, 16)
    emb = jnp.zeros((emb_rows, LANE), jnp.float32)
    emb = emb.at[0:V, 0:E_AVG].set(p["emb_avg"])
    emb = emb.at[V_PAD:V_PAD + V, 0:E_RNN].set(p["emb_rnn"])
    emb = emb.at[2 * V_PAD:2 * V_PAD + E_RNN, 0:H_RNN].set(p["w_ih"])
    emb_slab = emb.astype(jnp.bfloat16)

    r_whh = 0
    r_w1 = _round_up(r_whh + H_RNN, 8)
    r_w2 = _round_up(r_w1 + E_AVG + H_RNN, 8)
    r_brnn = _round_up(r_w2 + LIN, 8)
    r_b1 = r_brnn + 8
    r_b2 = r_b1 + 8
    par_rows = _round_up(r_b2 + 1, 8)
    par = jnp.zeros((par_rows, LANE), jnp.float32)
    par = par.at[r_whh:r_whh + H_RNN, 0:H_RNN].set(p["w_hh"])
    par = par.at[r_w1:r_w1 + E_AVG + H_RNN, 0:LIN].set(p["w1"])
    par = par.at[r_w2:r_w2 + LIN, 0:NC].set(p["w2"])
    par = par.at[r_brnn, 0:H_RNN].set((p["b_ih"] + p["b_hh"]).reshape(-1))
    par = par.at[r_b1, 0:LIN].set(p["b1"].reshape(-1))
    par = par.at[r_b2, 0:NC].set(p["b2"].reshape(-1))

    layout = dict(v_pad=V_PAD, e_avg=E_AVG, e_rnn=E_RNN, h_rnn=H_RNN,
                  lin_hid=LIN, n_cls=NC,
                  r_whh=r_whh, r_w1=r_w1, r_w2=r_w2,
                  r_brnn=r_brnn, r_b1=r_b1, r_b2=r_b2)
    return emb_slab, par, layout


def reference_forward(X0, X1, p):
    """Pure-jnp f32 reference matching the PyTorch forward semantics."""
    h_avg = p["emb_avg"][X0].mean(axis=1)                 # AverageEncoder
    emb1 = p["emb_rnn"][X1]                               # (B, S, E)
    B, S, _ = emb1.shape
    h = jnp.zeros((B, p["w_hh"].shape[0]), jnp.float32)
    for t in range(S):                                    # RecurrentEncoder
        h = jnp.tanh(emb1[:, t, :] @ p["w_ih"] + h @ p["w_hh"]
                     + p["b_ih"] + p["b_hh"])
    H = jnp.concatenate([h_avg, h], axis=1)
    z = H @ p["w1"] + p["b1"]
    z = z @ p["w2"] + p["b2"]
    return jax.nn.log_softmax(z, axis=1)


if __name__ == "__main__":
    # Small, deterministic configuration
    B, S = 16, 8
    VOCAB = 50
    E_AVG = E_RNN = H_RNN = LIN_HID = 32
    NUM_CLASSES = 8

    key = jax.random.PRNGKey(0)
    ks = jax.random.split(key, 12)

    base = {
        "emb_avg": jax.random.normal(ks[0], (VOCAB, E_AVG), jnp.float32) * 0.1,
        "emb_rnn": jax.random.normal(ks[1], (VOCAB, E_RNN), jnp.float32) * 0.1,
        # weights stored pre-transposed as (in, out)
        "w_ih": jax.random.normal(ks[2], (E_RNN, H_RNN), jnp.float32) * 0.1,
        "w_hh": jax.random.normal(ks[3], (H_RNN, H_RNN), jnp.float32) * 0.1,
        # PyTorch nn.RNN has two biases; both are generated and folded later.
        "b_ih": jax.random.normal(ks[4], (1, H_RNN), jnp.float32) * 0.01,
        "b_hh": jax.random.normal(ks[5], (1, H_RNN), jnp.float32) * 0.01,
        "w1": jax.random.normal(ks[6], (E_AVG + H_RNN, LIN_HID), jnp.float32) * 0.1,
        "b1": jax.random.normal(ks[7], (1, LIN_HID), jnp.float32) * 0.01,
        "w2": jax.random.normal(ks[8], (LIN_HID, NUM_CLASSES), jnp.float32) * 0.1,
        "b2": jax.random.normal(ks[9], (1, NUM_CLASSES), jnp.float32) * 0.01,
    }
    dims = dict(vocab=VOCAB, e_avg=E_AVG, e_rnn=E_RNN, h_rnn=H_RNN,
                lin_hid=LIN_HID, n_cls=NUM_CLASSES)
    emb_slab, par_slab, layout = prepare_params(base, dims)

    # Token-id inputs for the two encoders
    X0 = jax.random.randint(ks[10], (B, S), 0, VOCAB, jnp.int32)
    X1 = jax.random.randint(ks[11], (B, S), 0, VOCAB, jnp.int32)

    fwd = jax.jit(functools.partial(model_forward, layout=layout,
                                    num_classes=NUM_CLASSES))
    out = jax.block_until_ready(fwd(X0, X1, emb_slab, par_slab))

    # Correctness checks
    ref = reference_forward(X0, X1, base)
    assert out.shape == (B, NUM_CLASSES)
    assert bool(jnp.all(jnp.abs(jnp.exp(out).sum(axis=1) - 1.0) < 1e-4))
    assert bool(jnp.allclose(out, ref, atol=2e-2, rtol=2e-2))

    print("KERNEL_OK")
</pallas_src>

<mosaic_0001>
module attributes {stable_mosaic.version = 11 : i64} {
  func.func @_fused_forward_kernel(%arg0: i32, %arg1: memref<8x8xi32, #tpu.memory_space<vmem>>, %arg2: memref<8x8x1xi32, #tpu.memory_space<vmem>>, %arg3: memref<160x128xbf16, #tpu.memory_space<vmem>>, %arg4: memref<152x128xf32, #tpu.memory_space<vmem>>, %arg5: memref<8x128xf32, #tpu.memory_space<vmem>>, %arg6: memref<8x64xf32, #tpu.memory_space<vmem>>) attributes {dimension_semantics = [#tpu.dimension_semantics<parallel>], iteration_bounds = array<i64: 2>, scalar_prefetch = 0 : i64, scratch_operands = 1 : i64, tpu.core_type = #tpu.core_type<tc>, window_params = [{transform_indices = @transform_0, window_bounds = array<i64: 8, 8>}, {transform_indices = @transform_1, window_bounds = array<i64: 8, 8, 1>}, {pipeline_mode = #tpu.pipeline_mode<synchronous>, transform_indices = @transform_2, window_bounds = array<i64: 160, 128>}, {pipeline_mode = #tpu.pipeline_mode<synchronous>, transform_indices = @transform_3, window_bounds = array<i64: 152, 128>}, {transform_indices = @transform_4, window_bounds = array<i64: 8, 128>}]} {
    %c0 = arith.constant 0 : index
    %c0_0 = arith.constant 0 : index
    %0 = vector.load %arg1[%c0, %c0_0] : memref<8x8xi32, #tpu.memory_space<vmem>>, vector<8x8xi32>
    %1 = tpu.iota {dimensions = array<i32: 1>} : vector<8x64xi32>
    %cst = arith.constant 0.000000e+00 : f32
    %2 = vector.broadcast %cst : f32 to vector<8x64xf32>
    %3 = vector.extract_strided_slice %0 {offsets = [0, 0], sizes = [8, 1], strides = [1, 1]} : vector<8x8xi32> to vector<8x1xi32>
    %4 = vector.broadcast %3 : vector<8x1xi32> to vector<8x64xi32>
    %5 = arith.cmpi eq, %4, %1 : vector<8x64xi32>
    %6 = arith.extui %5 : vector<8x64xi1> to vector<8x64xi32>
    %7 = arith.sitofp %6 : vector<8x64xi32> to vector<8x64xf32>
    %8 = arith.addf %2, %7 : vector<8x64xf32>
    %9 = vector.extract_strided_slice %0 {offsets = [0, 1], sizes = [8, 1], strides = [1, 1]} : vector<8x8xi32> to vector<8x1xi32>
    %10 = vector.broadcast %9 : vector<8x1xi32> to vector<8x64xi32>
    %11 = arith.cmpi eq, %10, %1 : vector<8x64xi32>
    %12 = arith.extui %11 : vector<8x64xi1> to vector<8x64xi32>
    %13 = arith.sitofp %12 : vector<8x64xi32> to vector<8x64xf32>
    %14 = arith.addf %8, %13 : vector<8x64xf32>
    %15 = vector.extract_strided_slice %0 {offsets = [0, 2], sizes = [8, 1], strides = [1, 1]} : vector<8x8xi32> to vector<8x1xi32>
    %16 = vector.broadcast %15 : vector<8x1xi32> to vector<8x64xi32>
    %17 = arith.cmpi eq, %16, %1 : vector<8x64xi32>
    %18 = arith.extui %17 : vector<8x64xi1> to vector<8x64xi32>
    %19 = arith.sitofp %18 : vector<8x64xi32> to vector<8x64xf32>
    %20 = arith.addf %14, %19 : vector<8x64xf32>
    %21 = vector.extract_strided_slice %0 {offsets = [0, 3], sizes = [8, 1], strides = [1, 1]} : vector<8x8xi32> to vector<8x1xi32>
    %22 = vector.broadcast %21 : vector<8x1xi32> to vector<8x64xi32>
    %23 = arith.cmpi eq, %22, %1 : vector<8x64xi32>
    %24 = arith.extui %23 : vector<8x64xi1> to vector<8x64xi32>
    %25 = arith.sitofp %24 : vector<8x64xi32> to vector<8x64xf32>
    %26 = arith.addf %20, %25 : vector<8x64xf32>
    %27 = vector.extract_strided_slice %0 {offsets = [0, 4], sizes = [8, 1], strides = [1, 1]} : vector<8x8xi32> to vector<8x1xi32>
    %28 = vector.broadcast %27 : vector<8x1xi32> to vector<8x64xi32>
    %29 = arith.cmpi eq, %28, %1 : vector<8x64xi32>
    %30 = arith.extui %29 : vector<8x64xi1> to vector<8x64xi32>
    %31 = arith.sitofp %30 : vector<8x64xi32> to vector<8x64xf32>
    %32 = arith.addf %26, %31 : vector<8x64xf32>
    %33 = vector.extract_strided_slice %0 {offsets = [0, 5], sizes = [8, 1], strides = [1, 1]} : vector<8x8xi32> to vector<8x1xi32>
    %34 = vector.broadcast %33 : vector<8x1xi32> to vector<8x64xi32>
    %35 = arith.cmpi eq, %34, %1 : vector<8x64xi32>
    %36 = arith.extui %35 : vector<8x64xi1> to vector<8x64xi32>
    %37 = arith.sitofp %36 : vector<8x64xi32> to vector<8x64xf32>
    %38 = arith.addf %32, %37 : vector<8x64xf32>
    %39 = vector.extract_strided_slice %0 {offsets = [0, 6], sizes = [8, 1], strides = [1, 1]} : vector<8x8xi32> to vector<8x1xi32>
    %40 = vector.broadcast %39 : vector<8x1xi32> to vector<8x64xi32>
    %41 = arith.cmpi eq, %40, %1 : vector<8x64xi32>
    %42 = arith.extui %41 : vector<8x64xi1> to vector<8x64xi32>
    %43 = arith.sitofp %42 : vector<8x64xi32> to vector<8x64xf32>
    %44 = arith.addf %38, %43 : vector<8x64xf32>
    %45 = vector.extract_strided_slice %0 {offsets = [0, 7], sizes = [8, 1], strides = [1, 1]} : vector<8x8xi32> to vector<8x1xi32>
    %46 = vector.broadcast %45 : vector<8x1xi32> to vector<8x64xi32>
    %47 = arith.cmpi eq, %46, %1 : vector<8x64xi32>
    %48 = arith.extui %47 : vector<8x64xi1> to vector<8x64xi32>
    %49 = arith.sitofp %48 : vector<8x64xi32> to vector<8x64xf32>
    %50 = arith.addf %44, %49 : vector<8x64xf32>
    %cst_1 = arith.constant 1.250000e-01 : f32
    %51 = vector.broadcast %cst_1 : f32 to vector<8x64xf32>
    %52 = arith.mulf %50, %51 : vector<8x64xf32>
    %53 = arith.truncf %52 : vector<8x64xf32> to vector<8x64xbf16>
    %c0_2 = arith.constant 0 : index
    %c0_3 = arith.constant 0 : index
    %54 = vector.load %arg3[%c0_2, %c0_3] : memref<160x128xbf16, #tpu.memory_space<vmem>>, vector<64x32xbf16>
    %cst_4 = arith.constant dense<0.000000e+00> : vector<8x32xf32>
    %55 = tpu.matmul %53, %54, %cst_4 {dimension_numbers = #tpu.dot_dimension_numbers<[1], [0], [0], [1], [0, 0, 1, 1], [], []>} : vector<8x64xbf16>, vector<64x32xbf16>, vector<8x32xf32> -> vector<8x32xf32>
    %56 = tpu.iota {dimensions = array<i32: 2>} : vector<8x8x64xi32>
    %c0_5 = arith.constant 0 : index
    %c0_6 = arith.constant 0 : index
    %c0_7 = arith.constant 0 : index
    %57 = vector.load %arg2[%c0_5, %c0_6, %c0_7] : memref<8x8x1xi32, #tpu.memory_space<vmem>>, vector<8x8x1xi32>
    %58 = vector.broadcast %57 : vector<8x8x1xi32> to vector<8x8x64xi32>
    %59 = arith.cmpi eq, %58, %56 : vector<8x8x64xi32>
    %60 = arith.extui %59 : vector<8x8x64xi1> to vector<8x8x64xi32>
    %61 = arith.sitofp %60 : vector<8x8x64xi32> to vector<8x8x64xf32>
    %62 = vector.shape_cast %61 : vector<8x8x64xf32> to vector<64x64xf32>
    %63 = arith.truncf %62 : vector<64x64xf32> to vector<64x64xbf16>
    %c64 = arith.constant 64 : index
    %c0_8 = arith.constant 0 : index
    %64 = vector.load %arg3[%c64, %c0_8] : memref<160x128xbf16, #tpu.memory_space<vmem>>, vector<64x32xbf16>
    %c128 = arith.constant 128 : index
    %c0_9 = arith.constant 0 : index
    %65 = vector.load %arg3[%c128, %c0_9] : memref<160x128xbf16, #tpu.memory_space<vmem>>, vector<32x32xbf16>
    %cst_10 = arith.constant dense<0.000000e+00> : vector<64x32xf32>
    %66 = tpu.matmul %63, %64, %cst_10 {dimension_numbers = #tpu.dot_dimension_numbers<[1], [0], [0], [1], [0, 0, 1, 1], [], []>} : vector<64x64xbf16>, vector<64x32xbf16>, vector<64x32xf32> -> vector<64x32xf32>
    %67 = arith.truncf %66 : vector<64x32xf32> to vector<64x32xbf16>
    %c128_11 = arith.constant 128 : index
    %c0_12 = arith.constant 0 : index
    %68 = vector.load %arg4[%c128_11, %c0_12] : memref<152x128xf32, #tpu.memory_space<vmem>>, vector<1x32xf32>
    %cst_13 = arith.constant dense<0.000000e+00> : vector<64x32xf32>
    %69 = tpu.matmul %67, %65, %cst_13 {dimension_numbers = #tpu.dot_dimension_numbers<[1], [0], [0], [1], [0, 0, 1, 1], [], []>} : vector<64x32xbf16>, vector<32x32xbf16>, vector<64x32xf32> -> vector<64x32xf32>
    %70 = vector.broadcast %68 : vector<1x32xf32> to vector<64x32xf32>
    %71 = arith.addf %69, %70 : vector<64x32xf32>
    %c0_14 = arith.constant 0 : index
    %c0_15 = arith.constant 0 : index
    %72 = vector.load %arg4[%c0_14, %c0_15] : memref<152x128xf32, #tpu.memory_space<vmem>>, vector<32x32xf32>
    %73 = vector.extract_strided_slice %71 {offsets = [0, 0], sizes = [8, 32], strides = [1, 1]} : vector<64x32xf32> to vector<8x32xf32>
    %74 = math.tanh %73 : vector<8x32xf32>
    %75 = vector.extract_strided_slice %71 {offsets = [8, 0], sizes = [8, 32], strides = [1, 1]} : vector<64x32xf32> to vector<8x32xf32>
    %cst_16 = arith.constant dense<0.000000e+00> : vector<8x32xf32>
    %76 = tpu.matmul %74, %72, %cst_16 {dimension_numbers = #tpu.dot_dimension_numbers<[1], [0], [0], [1], [0, 0, 1, 1], [], []>} : vector<8x32xf32>, vector<32x32xf32>, vector<8x32xf32> -> vector<8x32xf32>
    %77 = arith.addf %75, %76 : vector<8x32xf32>
    %78 = math.tanh %77 : vector<8x32xf32>
    %79 = vector.extract_strided_slice %71 {offsets = [16, 0], sizes = [8, 32], strides = [1, 1]} : vector<64x32xf32> to vector<8x32xf32>
    %cst_17 = arith.constant dense<0.000000e+00> : vector<8x32xf32>
    %80 = tpu.matmul %78, %72, %cst_17 {dimension_numbers = #tpu.dot_dimension_numbers<[1], [0], [0], [1], [0, 0, 1, 1], [], []>} : vector<8x32xf32>, vector<32x32xf32>, vector<8x32xf32> -> vector<8x32xf32>
    %81 = arith.addf %79, %80 : vector<8x32xf32>
    %82 = math.tanh %81 : vector<8x32xf32>
    %83 = vector.extract_strided_slice %71 {offsets = [24, 0], sizes = [8, 32], strides = [1, 1]} : vector<64x32xf32> to vector<8x32xf32>
    %cst_18 = arith.constant dense<0.000000e+00> : vector<8x32xf32>
    %84 = tpu.matmul %82, %72, %cst_18 {dimension_numbers = #tpu.dot_dimension_numbers<[1], [0], [0], [1], [0, 0, 1, 1], [], []>} : vector<8x32xf32>, vector<32x32xf32>, vector<8x32xf32> -> vector<8x32xf32>
    %85 = arith.addf %83, %84 : vector<8x32xf32>
    %86 = math.tanh %85 : vector<8x32xf32>
    %87 = vector.extract_strided_slice %71 {offsets = [32, 0], sizes = [8, 32], strides = [1, 1]} : vector<64x32xf32> to vector<8x32xf32>
    %cst_19 = arith.constant dense<0.000000e+00> : vector<8x32xf32>
    %88 = tpu.matmul %86, %72, %cst_19 {dimension_numbers = #tpu.dot_dimension_numbers<[1], [0], [0], [1], [0, 0, 1, 1], [], []>} : vector<8x32xf32>, vector<32x32xf32>, vector<8x32xf32> -> vector<8x32xf32>
    %89 = arith.addf %87, %88 : vector<8x32xf32>
    %90 = math.tanh %89 : vector<8x32xf32>
    %91 = vector.extract_strided_slice %71 {offsets = [40, 0], sizes = [8, 32], strides = [1, 1]} : vector<64x32xf32> to vector<8x32xf32>
    %cst_20 = arith.constant dense<0.000000e+00> : vector<8x32xf32>
    %92 = tpu.matmul %90, %72, %cst_20 {dimension_numbers = #tpu.dot_dimension_numbers<[1], [0], [0], [1], [0, 0, 1, 1], [], []>} : vector<8x32xf32>, vector<32x32xf32>, vector<8x32xf32> -> vector<8x32xf32>
    %93 = arith.addf %91, %92 : vector<8x32xf32>
    %94 = math.tanh %93 : vector<8x32xf32>
    %95 = vector.extract_strided_slice %71 {offsets = [48, 0], sizes = [8, 32], strides = [1, 1]} : vector<64x32xf32> to vector<8x32xf32>
    %cst_21 = arith.constant dense<0.000000e+00> : vector<8x32xf32>
    %96 = tpu.matmul %94, %72, %cst_21 {dimension_numbers = #tpu.dot_dimension_numbers<[1], [0], [0], [1], [0, 0, 1, 1], [], []>} : vector<8x32xf32>, vector<32x32xf32>, vector<8x32xf32> -> vector<8x32xf32>
    %97 = arith.addf %95, %96 : vector<8x32xf32>
    %98 = math.tanh %97 : vector<8x32xf32>
    %99 = vector.extract_strided_slice %71 {offsets = [56, 0], sizes = [8, 32], strides = [1, 1]} : vector<64x32xf32> to vector<8x32xf32>
    %cst_22 = arith.constant dense<0.000000e+00> : vector<8x32xf32>
    %100 = tpu.matmul %98, %72, %cst_22 {dimension_numbers = #tpu.dot_dimension_numbers<[1], [0], [0], [1], [0, 0, 1, 1], [], []>} : vector<8x32xf32>, vector<32x32xf32>, vector<8x32xf32> -> vector<8x32xf32>
    %101 = arith.addf %99, %100 : vector<8x32xf32>
    %102 = math.tanh %101 : vector<8x32xf32>
    %c0_23 = arith.constant 0 : index
    %c0_24 = arith.constant 0 : index
    %103 = vector.load %arg6[%c0_23, %c0_24] : memref<8x64xf32, #tpu.memory_space<vmem>>, vector<8x32xf32>
    tpu.vector_store %arg6[%c0_23, %c0_24], %55 {strides = array<i32>} : memref<8x64xf32, #tpu.memory_space<vmem>>, vector<8x32xf32>,
    %c0_25 = arith.constant 0 : index
    %c32 = arith.constant 32 : index
    %104 = vector.load %arg6[%c0_25, %c32] : memref<8x64xf32, #tpu.memory_space<vmem>>, vector<8x32xf32>
    tpu.vector_store %arg6[%c0_25, %c32], %102 {strides = array<i32>} : memref<8x64xf32, #tpu.memory_space<vmem>>, vector<8x32xf32>,
    %c32_26 = arith.constant 32 : index
    %c0_27 = arith.constant 0 : index
    %105 = vector.load %arg4[%c32_26, %c0_27] : memref<152x128xf32, #tpu.memory_space<vmem>>, vector<64x32xf32>
    %c136 = arith.constant 136 : index
    %c0_28 = arith.constant 0 : index
    %106 = vector.load %arg4[%c136, %c0_28] : memref<152x128xf32, #tpu.memory_space<vmem>>, vector<1x32xf32>
    %c0_29 = arith.constant 0 : index
    %c0_30 = arith.constant 0 : index
    %107 = vector.load %arg6[%c0_29, %c0_30] : memref<8x64xf32, #tpu.memory_space<vmem>>, vector<8x64xf32>
    %cst_31 = arith.constant dense<0.000000e+00> : vector<8x32xf32>
    %108 = tpu.matmul %107, %105, %cst_31 {dimension_numbers = #tpu.dot_dimension_numbers<[1], [0], [0], [1], [0, 0, 1, 1], [], []>} : vector<8x64xf32>, vector<64x32xf32>, vector<8x32xf32> -> vector<8x32xf32>
    %109 = vector.broadcast %106 : vector<1x32xf32> to vector<8x32xf32>
    %110 = arith.addf %108, %109 : vector<8x32xf32>
    %c96 = arith.constant 96 : index
    %c0_32 = arith.constant 0 : index
    %111 = vector.load %arg4[%c96, %c0_32] : memref<152x128xf32, #tpu.memory_space<vmem>>, vector<32x128xf32>
    %c144 = arith.constant 144 : index
    %c0_33 = arith.constant 0 : index
    %112 = vector.load %arg4[%c144, %c0_33] : memref<152x128xf32, #tpu.memory_space<vmem>>, vector<1x128xf32>
    %cst_34 = arith.constant dense<0.000000e+00> : vector<8x128xf32>
    %113 = tpu.matmul %110, %111, %cst_34 {dimension_numbers = #tpu.dot_dimension_numbers<[1], [0], [0], [1], [0, 0, 1, 1], [], []>} : vector<8x32xf32>, vector<32x128xf32>, vector<8x128xf32> -> vector<8x128xf32>
    %114 = vector.broadcast %112 : vector<1x128xf32> to vector<8x128xf32>
    %115 = arith.addf %113, %114 : vector<8x128xf32>
    %116 = tpu.iota {dimensions = array<i32: 1>} : vector<8x128xi32>
    %c8_i32 = arith.constant 8 : i32
    %117 = vector.broadcast %c8_i32 : i32 to vector<8x128xi32>
    %118 = arith.cmpi slt, %116, %117 : vector<8x128xi32>
    %cst_35 = arith.constant -1.000000e+30 : f32
    %119 = vector.broadcast %cst_35 : f32 to vector<8x128xf32>
    %120 = arith.select %118, %115, %119 : vector<8x128xi1>, vector<8x128xf32>
    %cst_36 = arith.constant dense<0xFF800000> : vector<8xf32>
    %121 = vector.multi_reduction <maximumf>, %120, %cst_36 [1] : vector<8x128xf32> to vector<8xf32>
    %122 = vector.shape_cast %121 : vector<8xf32> to vector<8x1xf32>
    %123 = vector.broadcast %122 : vector<8x1xf32> to vector<8x128xf32>
    %124 = arith.subf %115, %123 : vector<8x128xf32>
    %125 = math.exp %124 : vector<8x128xf32>
    %cst_37 = arith.constant 0.000000e+00 : f32
    %126 = vector.broadcast %cst_37 : f32 to vector<8x128xf32>
    %127 = arith.select %118, %125, %126 : vector<8x128xi1>, vector<8x128xf32>
    %cst_38 = arith.constant dense<0.000000e+00> : vector<8xf32>
    %128 = vector.multi_reduction <add>, %127, %cst_38 [1] : vector<8x128xf32> to vector<8xf32>
    %129 = vector.shape_cast %128 : vector<8xf32> to vector<8x1xf32>
    %130 = math.log %129 : vector<8x1xf32>
    %131 = arith.addf %122, %130 : vector<8x1xf32>
    %132 = vector.broadcast %131 : vector<8x1xf32> to vector<8x128xf32>
    %133 = arith.subf %115, %132 : vector<8x128xf32>
    %c0_39 = arith.constant 0 : index
    %c0_40 = arith.constant 0 : index
    %134 = vector.load %arg5[%c0_39, %c0_40] : memref<8x128xf32, #tpu.memory_space<vmem>>, vector<8x128xf32>
    tpu.vector_store %arg5[%c0_39, %c0_40], %133 {strides = array<i32>} : memref<8x128xf32, #tpu.memory_space<vmem>>, vector<8x128xf32>,
    return
  }
  func.func @transform_0(%arg0: i32) -> (i32, i32) {
    %c0_i32 = arith.constant 0 : i32
    %c0_i32_0 = arith.constant 0 : i32
    return %arg0, %c0_i32 : i32, i32
  }
  func.func @transform_1(%arg0: i32) -> (i32, i32, i32) {
    %c0_i32 = arith.constant 0 : i32
    %c0_i32_0 = arith.constant 0 : i32
    %c0_i32_1 = arith.constant 0 : i32
    return %c0_i32, %arg0, %c0_i32_0 : i32, i32, i32
  }
  func.func @transform_2(%arg0: i32) -> (i32, i32) {
    %c0_i32 = arith.constant 0 : i32
    %c0_i32_0 = arith.constant 0 : i32
    %c0_i32_1 = arith.constant 0 : i32
    return %c0_i32, %c0_i32_0 : i32, i32
  }
  func.func @transform_3(%arg0: i32) -> (i32, i32) {
    %c0_i32 = arith.constant 0 : i32
    %c0_i32_0 = arith.constant 0 : i32
    %c0_i32_1 = arith.constant 0 : i32
    return %c0_i32, %c0_i32_0 : i32, i32
  }
  func.func @transform_4(%arg0: i32) -> (i32, i32) {
    %c0_i32 = arith.constant 0 : i32
    %c0_i32_0 = arith.constant 0 : i32
    return %arg0, %c0_i32 : i32, i32
  }
}

</mosaic_0001>

<bundles_post_ra>
// kernel: model_forward.1
= control target key start
LH: loop header
LB: loop body
LE: loop exit
PB: predicated region body
PF: predicated region fallthrough
CT: control target
= control target key end

     0   :  { %9 = vsyncpa [#allocation5], 0  ;;  %s2026_s15 = smov 0   ;;  %s2028_s16 = smov 0   ;;  %s2327_s0 = inlined_call_operand.vmem [shape: s32[16,8], index: 0, kind: input, shape index: {}]   ;;  %s2328_s1 = inlined_call_operand.vmem [shape: s32[8,16,1], index: 1, kind: input, shape index: {}]   ;;  %s2329_s2 = inlined_call_operand.hbm [shape: bf16[160,128], index: 2, kind: input, shape index: {}]   ;;  %s2330_s3 = inlined_call_operand.vmem [shape: f32[152,128], index: 3, kind: input, shape index: {}]   ;;  %s2331_s4 = inlined_call_operand.vmem [shape: f32[16,128], index: 4, kind: output, shape index: {}]  }
   0x1   :  { %s2030_s17 = smov 0  }
   0x2 LB: > { %s2042_s18 = sadd.s32 4294967295, %s1984_s17   ;;  %s2045_s19 = sadd.s32 1, %s1984_s17   ;;  %s1984_s17 = sphi %s2030_s17, %s2343_s17   ;;  %s1980_s16 = sphi %s2028_s16, %s2342_s16   ;;  %s1976_s15 = sphi %s2026_s15, %s2341_s15  }
   0x3   : > { %s45_s20 = ssub.s32 %s1984_s17, %s2045_s19  ;;  %s48_s21 = sadd.s32 1, %s1980_s16 }
   0x4   : > { %p46_p0 = scmp.eq.s32.totalorder %s45_s20, 0  ;;  %p55_p1 = scmp.ne.s32.totalorder %s1980_s16, %s1976_s15 }
   0x5   : > { %p56_p2 = scmp.eq.s32.totalorder %s1984_s17, 0  ;;  %p1506_p3 = scmp.ge.s32.totalorder %s1984_s17, 1 }
   0x6   : > { %s2055_s22 = scalar_select %p46_p0, %s1980_s16, %s48_s21  }
   0x7   : > { %p2057_p4 = por %p56_p2, %p55_p1  ;;  %p140_p5 = scmp.lt.s32.totalorder %s1984_s17, 3 }
   0x8   : > { %p2332_p6 = scmp.eq.s32.totalorder %s2042_s18, 0  ;;  %s1986_s25 = smov [#allocation4]  }
   0x9   : > { %s2334_s23 = scalar_select %p2057_p4, 1, 0 }
   0xa   : > { %p2063_p7 = pnand %p1506_p3, %p140_p5  ;;  %s152_s26 = sshll.u32 %s1986_s25, 4  ;;  %s153_s26 = int_to_ptr.vmem [resolvable:$true] %s152_s26 }
   0xb   : > { %s1930_s30 = scalar_lea.hbm %s2329_s2, 1280 }
   0xc   : > { %s2335_s24 = scalar_select %p2063_p7, 1, 0 }
   0xd   : > { %p1844_p8 = pneg %p2063_p7  ;;  %p1931_p10 = scmp.ne.s32.totalorder %s2329_s2, %s1930_s30 }
   0xe   : > { %p1937_p0 = scmp.lt.u32.totalorder %s1930_s30, %s2329_s2 }
   0xf   : > { %p2071_p9 = pnand %p2332_p6, %p1844_p8 }
  0x11   : > { %p1932_p11 = pneg %p2071_p9 }
  0x13   : > { %p1933_p12 = pnand %p1932_p11, %p1931_p10 }
  0x15   : > { %p1934_p13 = pneg %p1933_p12 }
  0x17   : > { %p1939_p1 = pnand %p1937_p0, %p1934_p13 }
  0x19   : > { %1942 = shalt.err (!%p1939_p1)
}
  0x1a   : > { %s1943_s9 = scalar_lea.vmem %s153_s26, 1280  ;;  %p1951_p8 = scmp.lt.s32.totalorder %s153_s26, %s153_s26 }
  0x1b   : > { %p1944_p2 = scmp.ne.s32.totalorder %s153_s26, %s1943_s9  ;;  %p1952_p6 = scmp.lt.s32.totalorder %s1943_s9, %s1943_s9 }
  0x1d   : > { %p1946_p3 = pnand %p1944_p2, %p1932_p11  ;;  %p1953_p7 = por %p1952_p6, %p1951_p8 }
  0x1f   : > { %p1947_p5 = pneg %p1946_p3 }
  0x21   : > { %p1954_p4 = pnand %p1953_p7, %p1947_p5 }
  0x23   : > { %1957 = shalt.err (!%p1954_p4)
}
  0x24   : > { %s1987_s10 = smov 64   ;;  %s1988_s11 = smov 4  }
  0x25   : > { %1847 = dma.hbm_to_vmem [thread:$0]  (!%p2071_p9), %s2329_s2, 1280, %s153_s26, [#allocation5], %s1987_s10, %s1987_s10, %s1988_s11  }
  0x26   : > { %p1508_p10 = scmp.ge.s32.totalorder %s1984_s17, 2 }
  0x27   : > { %p2337_p12 = scmp.ne.s32.totalorder (!%p1508_p10), %s2334_s23, 0 }
  0x28   : > { %165 = sbr.rel (%p1508_p10) target bundleno = 55 (0x37), region = 24 }
  0x2f   : > { %175 = sbr.rel (!%p2337_p12) target bundleno = 55 (0x37), region = 32  ;;  %s177_s14 = sand.u32 (%p2337_p12), 1, %s1980_s16  }
  0x30   : > { %s1510_s20 = sshll.u32 (%p2337_p12), %s1984_s17, 3  ;;  %s1509_s21 = sshll.u32 (%p2337_p12), %s177_s14, 6 }
  0x31   : > { %s181_s29 = scalar_lea.vmem (%p2337_p12), %s2328_s1, %s1510_s20  ;;  %s179_s27 = scalar_lea.vmem (%p2337_p12), [#allocation3], %s1509_s21 }
  0x32   : > { %v223_v0 = vld [vmem:[%s181_s29] sm:$0xff] (%p2337_p12)  ;;  %v225_v1 = vld [vmem:[%s181_s29 + $0x10] sm:$0xff] (%p2337_p12) }
  0x33   : > { %v227_v2 = vld [vmem:[%s181_s29 + $0x20] sm:$0xff] (%p2337_p12)  ;;  %224 = vst [vmem:[%s179_s27] sm:$0xff] (%p2337_p12), %v223_v0  ;;  %226 = vst [vmem:[%s179_s27 + $0x8] sm:$0xff] (%p2337_p12), %v225_v1  ;;  %v229_v3 = vld [vmem:[%s181_s29 + $0x30] sm:$0xff] (%p2337_p12) }
  0x34   : > { %228 = vst [vmem:[%s179_s27 + $0x10] sm:$0xff] (%p2337_p12), %v227_v2  ;;  %v231_v4 = vld [vmem:[%s181_s29 + $0x40] sm:$0xff] (%p2337_p12)  ;;  %v233_v5 = vld [vmem:[%s181_s29 + $0x50] sm:$0xff] (%p2337_p12)  ;;  %230 = vst [vmem:[%s179_s27 + $0x18] sm:$0xff] (%p2337_p12), %v229_v3 }
  0x35   : > { %232 = vst [vmem:[%s179_s27 + $0x20] sm:$0xff] (%p2337_p12), %v231_v4  ;;  %234 = vst [vmem:[%s179_s27 + $0x28] sm:$0xff] (%p2337_p12), %v233_v5  ;;  %v235_v6 = vld [vmem:[%s181_s29 + $0x60] sm:$0xff] (%p2337_p12)  ;;  %v237_v7 = vld [vmem:[%s181_s29 + $0x70] sm:$0xff] (%p2337_p12) }
  0x36   : > { %236 = vst [vmem:[%s179_s27 + $0x30] sm:$0xff] %v235_v6  ;;  %238 = vst [vmem:[%s179_s27 + $0x38] sm:$0xff] %v237_v7 }
  0x37 PF: > { %p2338_p4 = scmp.ne.s32.totalorder %s2335_s24, 0 }
  0x38   : > { %s250_s17 = sand.u32 (!%p2338_p4), 1, %s1976_s15   ;;  %p2339_p6 = scmp.eq.s32.totalorder (!%p2338_p4), %s2042_s18, 0 }
  0x39   : > { %247 = sbr.rel (%p2338_p4) target bundleno = 3094 (0xc16), region = 70  ;;  %s1512_s23 = sshll.u32 (!%p2338_p4), %s250_s17, 6 }
  0x3a   : > { %s2102_s26 = scalar_lea.vmem (!%p2338_p4), [#allocation3], %s1512_s23 }
  0x40   : > { %1971 = dma.done.wait (%p2339_p6), [#allocation5], 1280   ;;  %p2340_p7 = pmov %p2339_p6 }
  0x41   : > { %p282_p9 = scmp.lt.s32.totalorder %s2042_s18, 1  ;;  %v1989_v8 = vmov 0   ;;  %v1990_v9 = vmov 0.0   ;;  %v430_v10 = vld [vmem:[%s2102_s26 + $0x10] sm:$0xff]  ;;  %v428_v11 = vld [vmem:[%s2102_s26] sm:$0xff]  ;;  %v431_v12 = vld [vmem:[%s2102_s26 + $0x18] sm:$0xff]  ;;  %v292_v31 = vlaneseq }
  0x42   : > { %1973 = vsyncadd (%p2340_p7), [#allocation5], 4294966016  ;;  %1890 = vset.pattern.permute.xlu1 %v1989_v8  ;;  %1889 = vset.pattern.permute.xlu0 %v1989_v8  ;;  %v429_v13 = vld [vmem:[%s2102_s26 + $0x8] sm:$0xff]  ;;  %v1900_v14 = vld [vmem:[#allocation4 + $0x20] sm:$0xff]   ;;  %v1991_v18 = vmov 1   ;;  %v1992_v20 = vmov 2  }
  0x43   : > { %s2345_s18 = smov (!%p282_p9, %s2042_s18), 1  ;;  %1633 = vmatprep.subr.bf16.mxu0 %v1990_v9  ;;  %443 = vperm.xlu1 %1890, %v430_v10   ;;  %v1901_v15 = vld [vmem:[#allocation4 + $0x28] sm:$0xff]   ;;  %v1902_v17 = vld [vmem:[#allocation4 + $0x30] sm:$0xff]   ;;  %v1903_v19 = vld [vmem:[#allocation4 + $0x38] sm:$0xff]   ;;  %v1993_v21 = vmov 3   ;;  %v1994_v22 = vmov 5  }
  0x44   : > { %s1514_s15 = sshll.u32 %s2345_s18, 3  ;;  %437 = vperm.xlu0 %1889, %v428_v11   ;;  %1645 = vmatprep.subr.bf16.mxu1 %v1900_v14  ;;  %v1995_v23 = vmov 4   ;;  %v1904_v24 = vld [vmem:[#allocation4] sm:$0xff]   ;;  %v1996_v25 = vmov 6   ;;  %v1905_v26 = vld [vmem:[#allocation4 + $0x8] sm:$0xff]   ;;  %v1997_v27 = vmov 7  }
  0x45   : > { %s285_s5 = scalar_lea.vmem %s2327_s0, %s1514_s15  ;;  %1646 = vmatpush3.bf16.msra.mxu1 %v1900_v14  ;;  %1634 = vmatpush3.bf16.msra.mxu0 %v1904_v24  ;;  %v1906_v28 = vld [vmem:[#allocation4 + $0x10] sm:$0xff]   ;;  %v1907_v29 = vld [vmem:[#allocation4 + $0x18] sm:$0xff]   ;;  %vm1998_vm0 = vmmov 0   ;;  %v1908_v30 = vld [vmem:[#allocation4 + $0x40] sm:$0xff]   ;;  %v2128_v32 = vand.u32 127, %v292_v31  ;;  %vm384_vm5 = vcmask 523264  }
  0x46   : > { %v291_v16 = vld [vmem:[%s285_s5] sm:$0xff]  ;;  %1647 = vmatprep.subr.bf16.mxu1 %v1901_v15  ;;  %1635 = vmatprep.subr.bf16.mxu0 %v1990_v9  ;;  %v1909_v4 = vld [vmem:[#allocation4 + $0x48] sm:$0xff]   ;;  %v432_v6 = vld [vmem:[%s2102_s26 + $0x20] sm:$0xff]  ;;  %vm622_vm14 = vcmask 261120   ;;  %s2000_s20 = smov 32   ;;  %s289_s5 = scalar_lea.vmem %s2331_s4, %s1514_s15 }
  0x47   : > { %446 = vperm.xlu1 %1890, %v431_v12   ;;  %1641 = vmatprep.mubr.msk.bf16.mxu0 %vm1998_vm0, %v1990_v9  ;;  %v433_v5 = vld [vmem:[%s2102_s26 + $0x28] sm:$0xff]  ;;  %v434_v7 = vld [vmem:[%s2102_s26 + $0x30] sm:$0xff]  ;;  %v700_v10 = vld [vmem:[%s2330_s3] sm:$0xff]  ;;  %v1999_v12 = vmov 0.0|0.0  }
  0x48   : > { %440 = vperm.xlu0 %1889, %v429_v13   ;;  %v701_v11 = vld [vmem:[%s2330_s3 + $0x8] sm:$0xff] }
  0x49   : > { %1648 = vmatpush3.bf16.msra.mxu1 %v1901_v15  ;;  %1636 = vmatpush3.bf16.msra.mxu0 %v1905_v26  ;;  %v2168_v13 = vpack.c.bf16 %v701_v11, %v700_v10 }
  0x4a   : > { %1649 = vmatprep.subr.bf16.mxu1 %v1902_v17  ;;  %1637 = vmatprep.subr.bf16.mxu0 %v1990_v9 }
  0x4b   : > { %1891 = vset.pattern.permute.xlu1 %v1991_v18 }
  0x4c   : > { %295 = vperm.xlu0 %1889, %v291_v16   ;;  %302 = vperm.xlu1 %1891, %v291_v16  }
  0x4d   : > { %1650 = vmatpush3.bf16.msra.mxu1 %v1902_v17  ;;  %1638 = vmatpush3.bf16.msra.mxu0 %v1906_v28 }
  0x4e   : > { %1651 = vmatprep.subr.bf16.mxu1 %v1903_v19  ;;  %1639 = vmatprep.subr.bf16.mxu0 %v1990_v9 }
  0x50   : > { %1892 = vset.pattern.permute.xlu0 %v1992_v20  ;;  %1893 = vset.pattern.permute.xlu1 %v1993_v21 }
  0x51   : > { %309 = vperm.xlu0 %1892, %v291_v16   ;;  %316 = vperm.xlu1 %1893, %v291_v16  }
  0x52   : > { %1652 = vmatpush3.bf16.msra.mxu1 %v1903_v19  ;;  %1640 = vmatpush3.bf16.msra.mxu0 %v1907_v29 }
  0x53   : > { %1661 = vmatprep.subr.bf16.mxu0 %v1908_v30  ;;  %1780 = vmatprep.subr.bf16.mxu1 %v1999_v12 }
  0x55   : > { %1895 = vset.pattern.permute.xlu0 %v1994_v22  ;;  %1894 = vset.pattern.permute.xlu1 %v1995_v23 }
  0x56   : > { %330 = vperm.xlu0 %1895, %v291_v16   ;;  %323 = vperm.xlu1 %1894, %v291_v16  }
  0x5a   : > { %1898 = vset.pattern.permute.xlu0 %v1989_v8  ;;  %1896 = vset.pattern.permute.xlu1 %v1996_v25 }
  0x5b   : > { %337 = vperm.xlu1 %1896, %v291_v16   ;;  %449 = vperm.xlu0 %1898, %v432_v6  }
  0x5f   : > { %1897 = vset.pattern.permute.xlu1 %v1997_v27 }
  0x60   : > { %344 = vperm.xlu1 %1897, %v291_v16  }
  0x64   : > { %1899 = vset.pattern.permute.xlu1 %v1989_v8  ;;  %v435_v8 = vld [vmem:[%s2102_s26 + $0x38] sm:$0xff] }
  0x65   : > { %452 = vperm.xlu1 %1899, %v433_v5   ;;  %458 = vperm.xlu0 %1898, %v435_v8  }
  0x69   : > { %455 = vperm.xlu1 %1899, %v434_v7  }
  0xc2   : > { %v444_v33 = vpop.permute.xlu1 %443 }
  0xc3   : > { %v438_v34 = vpop.permute.xlu0 %437  ;;  %vm462_vm1 = vcmp.eq.s32.totalorder %v444_v33, %v2128_v32 }
  0xc4   : > { %vm460_vm2 = vcmp.eq.s32.totalorder %v438_v34, %v2128_v32  ;;  %v1531_v37 = vsel %vm462_vm1, 1.0, %v1990_v9 }
  0xc5   : > { %v1529_v38 = vsel %vm460_vm2, 1.0, %v1990_v9 }
  0xc6   : > { %v447_v35 = vpop.permute.xlu1 %446 }
  0xc7   : > { %v441_v36 = vpop.permute.xlu0 %440  ;;  %vm463_vm3 = vcmp.eq.s32.totalorder %v447_v35, %v2128_v32  ;;  %v702_v35 = vld [vmem:[%s2330_s3 + $0x10] sm:$0xff] }
  0xc8   : > { %vm461_vm4 = vcmp.eq.s32.totalorder %v441_v36, %v2128_v32  ;;  %v1532_v39 = vsel %vm463_vm3, 1.0, %v1990_v9  ;;  %v703_v36 = vld [vmem:[%s2330_s3 + $0x18] sm:$0xff] }
  0xc9   : > { %v1530_v40 = vsel %vm461_vm4, 1.0, %v1990_v9  ;;  %v485_v41 = vpack.c.bf16 %v1532_v39, %v1531_v37  ;;  %v2196_v37 = vpack.c.bf16 %v703_v36, %v702_v35  ;;  %v1243_v36 = vld [vmem:[%s2330_s3 + $0x50] sm:$0xff]  ;;  %vm1406_vm4 = vcmp.lt.s32.totalorder %v2128_v32, 8 }
  0xca   : > { %v484_v42 = vpack.c.bf16 %v1530_v40, %v1529_v38  ;;  %v2205_v38 = vld [vmem:[%s2330_s3 + $0x80] ss:$0 sm:$0xff] }
  0xcb   : > { %v296_v43 = vpop.permute.xlu0 %295  ;;  %v303_v44 = vpop.permute.xlu1 %302 }
  0xcc   : > { %vm297_vm6 = vcmp.eq.s32.totalorder %v296_v43, %v2128_v32  ;;  %1653 = vmatprep.mubr.msk.bf16.mxu1 %vm384_vm5, %v484_v42  ;;  %vm304_vm7 = vcmp.eq.s32.totalorder %v303_v44, %v2128_v32 }
  0xcd   : > { %1654 = vmatmul.mubr.msk.bf16.vlgmr.msra.gmra.mrb[0].mxu1 %vm384_vm5, %v485_v41  ;;  %v1516_v45 = vsel %vm297_vm6, 1.0, %v1990_v9  ;;  %v1517_v46 = vsel %vm304_vm7, 1.0, %v1990_v9 }
  0xce   : > { %v307_v48 = vadd.f32 %v1517_v46, %v1516_v45  ;;  %1782 = vmatpush3.bf16.msra.mxu1 %v2168_v13 }
  0xcf   : > { %1783 = vmatprep.subr.bf16.mxu1 %v1999_v12 }
  0xd0   : > { %v310_v47 = vpop.permute.xlu0 %309  ;;  %v317_v49 = vpop.permute.xlu1 %316 }
  0xd1   : > { %vm311_vm8 = vcmp.eq.s32.totalorder %v310_v47, %v2128_v32  ;;  %vm318_vm9 = vcmp.eq.s32.totalorder %v317_v49, %v2128_v32 }
  0xd2   : > { %v1518_v50 = vsel %vm311_vm8, 1.0, %v1990_v9  ;;  %v1519_v52 = vsel %vm318_vm9, 1.0, %v1990_v9  ;;  %1785 = vmatpush3.bf16.msra.mxu1 %v2196_v37 }
  0xd3   : > { %v314_v51 = vadd.f32 %v1518_v50, %v307_v48  ;;  %1792 = vmatprep.subr.bf16.mxu1 %v1999_v12 }
  0xd5   : > { %v331_v53 = vpop.permute.xlu0 %330  ;;  %v324_v54 = vpop.permute.xlu1 %323  ;;  %v321_v55 = vadd.f32 %v1519_v52, %v314_v51 }
  0xd6   : > { %vm325_vm10 = vcmp.eq.s32.totalorder %v324_v54, %v2128_v32  ;;  %vm332_vm11 = vcmp.eq.s32.totalorder %v331_v53, %v2128_v32 }
  0xd7   : > { %v1520_v56 = vsel %vm325_vm10, 1.0, %v1990_v9  ;;  %v1521_v58 = vsel %vm332_vm11, 1.0, %v1990_v9 }
  0xd8   : > { %v328_v57 = vadd.f32 %v1520_v56, %v321_v55 }
  0xda   : > { %v338_v59 = vpop.permute.xlu1 %337  ;;  %v335_v60 = vadd.f32 %v1521_v58, %v328_v57  ;;  %v450_v25 = vpop.permute.xlu0 %449 }
  0xdb   : > { %vm339_vm12 = vcmp.eq.s32.totalorder %v338_v59, %v2128_v32  ;;  %vm464_vm1 = vcmp.eq.s32.totalorder %v450_v25, %v2128_v32  ;;  %v1239_v25 = vld [vmem:[%s2330_s3 + $0x30] sm:$0xff] }
  0xdc   : > { %v1522_v61 = vsel %vm339_vm12, 1.0, %v1990_v9  ;;  %v1533_v27 = vsel %vm464_vm1, 1.0, %v1990_v9 }
  0xdd   : > { %v342_v63 = vadd.f32 %v1522_v61, %v335_v60 }
  0xdf   : > { %v345_v62 = vpop.permute.xlu1 %344 }
  0xe0   : > { %vm346_vm13 = vcmp.eq.s32.totalorder %v345_v62, %v2128_v32 }
  0xe1   : > { %v1523_v0 = vsel %vm346_vm13, 1.0, %v1990_v9 }
  0xe2   : > { %v349_v1 = vadd.f32 %v1523_v0, %v342_v63 }
  0xe4   : > { %v350_v2 = vmul.f32 0.125, %v349_v1  ;;  %v453_v24 = vpop.permute.xlu1 %452 }
  0xe5   : > { %vm465_vm15 = vcmp.eq.s32.totalorder %v453_v24, %v2128_v32  ;;  %v1238_v24 = vld [vmem:[%s2330_s3 + $0x28] sm:$0xff] }
  0xe6   : > { %v351_v3 = vpack.c.bf16 %v350_v2, %v350_v2  ;;  %v1534_v26 = vsel %vm465_vm15, 1.0, %v1990_v9 }
  0xe7   : > { %v486_v28 = vpack.c.bf16 %v1534_v26, %v1533_v27  ;;  %v1240_v27 = vld [vmem:[%s2330_s3 + $0x38] sm:$0xff] }
  0xe8   : > { %1642 = vmatmul.mubr.msk.bf16.vlgmr.msra.gmra.mrb[0].mxu0 %vm384_vm5, %v351_v3  ;;  %v456_v29 = vpop.permute.xlu1 %455 }
  0xe9   : > { %1662 = vmatpush3.bf16.msra.mxu0 %v1908_v30  ;;  %vm466_vm2 = vcmp.eq.s32.totalorder %v456_v29, %v2128_v32  ;;  %v459_v30 = vpop.permute.xlu0 %458  ;;  %1657 = vmatprep.mubr.msk.bf16.mxu1 %vm384_vm5, %v486_v28  ;;  %v1826_v28 = vpack.c.bf16 %v1240_v27, %v1239_v25  ;;  %v1241_v29 = vld [vmem:[%s2330_s3 + $0x40] sm:$0xff] }
  0xea   : > { %1663 = vmatprep.subr.bf16.mxu0 %v1909_v4  ;;  %v1535_v31 = vsel %vm466_vm2, 1.0, %v1990_v9  ;;  %vm467_vm3 = vcmp.eq.s32.totalorder %v459_v30, %v2128_v32  ;;  %v1242_v30 = vld [vmem:[%s2330_s3 + $0x48] sm:$0xff] }
  0xeb   : > { %v1536_v33 = vsel %vm467_vm3, 1.0, %v1990_v9 }
  0xec   : > { %v487_v34 = vpack.c.bf16 %v1536_v33, %v1535_v31  ;;  %v1829_v33 = vpack.c.bf16 %v1242_v30, %v1241_v29 }
  0xed   : > { %1664 = vmatpush3.bf16.msra.mxu0 %v1909_v4 }
  0xee   : > { %1786 = vmatprep.subr.bf16.mxu0 %v1999_v12  ;;  %1658 = vmatmul.mubr.msk.bf16.gmra.mrb[4].mxu1 %vm384_vm5, %v487_v34 }
  0xef   : > { %1681 = vmatprep.mubr.msk.f32.mxu1 %vm1998_vm0, %v1990_v9 }
 0x1a0   : > { %v1655_v14 = vpop.f32.mrb[0].mxu1 }
 0x1a1   : > { %v570_v15 = vpop.f32.mrb[1].mxu1 }
 0x1a2   : > { %v1656_v16 = vpop.f32.mrb[2].mxu1 }
 0x1a3   : > { %v602_v17 = vpack.c.bf16 %v1656_v16, %v1655_v14  ;;  %v573_v18 = vpop.f32.mrb[3].mxu1 }
 0x1a4   : > { %v601_v19 = vpack.c.bf16 %v573_v18, %v570_v15 }
 0x1a6   : > { %1665 = vmatprep.mubr.msk.bf16.mxu0 %vm622_vm14, %v601_v19 }
 0x1a7   : > { %1666 = vmatmul.mubr.msk.bf16.vlgmr.msra.gmra.mrb[4].mxu0 %vm622_vm14, %v602_v17 }
 0x1a8   : > { %1788 = vmatpush3.bf16.msra.mxu0 %v2168_v13 }
 0x1a9   : > { %1789 = vmatprep.subr.bf16.mxu0 %v1999_v12 }
 0x1ac   : > { %1791 = vmatpush3.bf16.msra.mxu0 %v2196_v37 }
 0x1ad   : > { %1798 = vmatprep.subr.bf16.mxu0 %v1999_v12 }
 0x1bb   : > { %v422_v20 = vpop.f32.mrb[0].mxu0 }
 0x1bc   : > { %1230 = vst.msk [vmem:[#allocation2] sm:$0xff] %vm622_vm14, %v422_v20  ;;  %v1643_v21 = vpop.f32.mrb[1].mxu0 }
 0x1bd   : > { %v425_v22 = vpop.f32.mrb[2].mxu0 }
 0x1be   : > { %v1644_v23 = vpop.f32.mrb[3].mxu0 }
 0x1bf   : > { %v1237_v23 = vld [vmem:[%s2330_s3 + $0x20] sm:$0xff] }
 0x1c0   : > { %v1823_v26 = vpack.c.bf16 %v1238_v24, %v1237_v23 }
 0x1c1   : > { %v1659_v45 = vpop.f32.mrb[4].mxu1 }
 0x1c2   : > { %v586_v46 = vpop.f32.mrb[5].mxu1 }
 0x1c3   : > { %v1660_v47 = vpop.f32.mrb[6].mxu1 }
 0x1c4   : > { %v604_v48 = vpack.c.bf16 %v1660_v47, %v1659_v45  ;;  %v589_v49 = vpop.f32.mrb[7].mxu1  ;;  %v1326_v45 = vld [vmem:[%s2330_s3 + $0x70] sm:$0xff] }
 0x1c5   : > { %v603_v50 = vpack.c.bf16 %v589_v49, %v586_v46  ;;  %v1327_v46 = vld [vmem:[%s2330_s3 + $0x78] sm:$0xff] }
 0x1c6   : > { %v1838_v47 = vpack.c.bf16 %v1327_v46, %v1326_v45 }
 0x1c7   : > { %1669 = vmatprep.mubr.msk.bf16.mxu0 %vm622_vm14, %v603_v50 }
 0x1c8   : > { %1670 = vmatmul.mubr.msk.bf16.gmra.mrb[8].mxu0 %vm622_vm14, %v604_v48 }
 0x1c9   : > { %1692 = vmatprep.mubr.msk.f32.mxu0 %vm1998_vm0, %v1990_v9 }
 0x27a   : > { %v1667_v39 = vpop.f32.mrb[4].mxu0 }
 0x27b   : > { %v669_v40 = vpop.f32.mrb[5].mxu0  ;;  %v678_v60 = vadd.f32 %v1667_v39, %v2205_v38  ;;  %v1324_v39 = vld [vmem:[%s2330_s3 + $0x60] sm:$0xff] }
 0x27c   : > { %v670_v41 = vadd.f32 %v2205_v38, %v669_v40  ;;  %v1668_v42 = vpop.f32.mrb[6].mxu0  ;;  %v1325_v40 = vld [vmem:[%s2330_s3 + $0x68] sm:$0xff] }
 0x27d   : > { %v672_v43 = vpop.f32.mrb[7].mxu0  ;;  %v681_v1 = vadd.f32 %v1668_v42, %v2205_v38 }
 0x27e   : > { %1910 = vtanh.f32 %v670_v41  ;;  %v673_v51 = vadd.f32 %v2205_v38, %v672_v43  ;;  %v1835_v41 = vpack.c.bf16 %v1325_v40, %v1324_v39 }
 0x288   : > { %v1911_v44 = vpop.eup %1910 }
 0x289   : > { %1682 = vmatmul.mubr.msk.f32.vlgmr.msra.gmra.mrb[8].mxu1 %vm622_vm14, %v1911_v44 }
 0x28a   : > { %1794 = vmatpush3.bf16.msra.mxu1 %v2168_v13  ;;  %1703 = vmatprep.mubr.msk.f32.mxu1 %vm1998_vm0, %v1990_v9 }
 0x28b   : > { %1795 = vmatprep.subr.bf16.mxu1 %v1999_v12 }
 0x28e   : > { %1797 = vmatpush3.bf16.msra.mxu1 %v2196_v37 }
 0x28f   : > { %1804 = vmatprep.subr.bf16.mxu1 %v1999_v12 }
 0x29b   : > { %v1671_v56 = vpop.f32.mrb[8].mxu0 }
 0x29c   : > { %v685_v57 = vpop.f32.mrb[9].mxu0 }
 0x29d   : > { %v2227_v58 = vpop.f32.mrb[10].mxu0  ;;  %v686_v6 = vadd.f32 %v2205_v38, %v685_v57 }
 0x29e   : > { %v688_v59 = vpop.f32.mrb[11].mxu0 }
 0x29f   : > { %v689_v14 = vadd.f32 %v2205_v38, %v688_v59 }
 0x35c   : > { %v774_v52 = vpop.f32.mrb[8].mxu1 }
 0x35d   : > { %v778_v53 = vadd.f32 %v774_v52, %v673_v51  ;;  %v1683_v54 = vpop.f32.mrb[9].mxu1  ;;  %v1561_v51 = vld [vmem:[%s2330_s3 + $0x90] ss:$0 sm:$0xff] }
 0x35f   : > { %1912 = vtanh.f32 %v778_v53 }
 0x369   : > { %v1913_v55 = vpop.eup %1912 }
 0x36a   : > { %1693 = vmatmul.mubr.msk.f32.vlgmr.msra.gmra.mrb[12].mxu0 %vm622_vm14, %v1913_v55 }
 0x36b   : > { %1800 = vmatpush3.bf16.msra.mxu0 %v2168_v13  ;;  %1714 = vmatprep.mubr.msk.f32.mxu0 %vm1998_vm0, %v1990_v9 }
 0x36c   : > { %1801 = vmatprep.subr.bf16.mxu0 %v1999_v12 }
 0x36f   : > { %1803 = vmatpush3.bf16.msra.mxu0 %v2196_v37 }
 0x370   : > { %1810 = vmatprep.subr.bf16.mxu0 %v1999_v12 }
 0x43d   : > { %v849_v61 = vpop.f32.mrb[12].mxu0 }
 0x43e   : > { %v853_v62 = vadd.f32 %v849_v61, %v678_v60  ;;  %v1694_v63 = vpop.f32.mrb[13].mxu0 }
 0x440   : > { %1914 = vtanh.f32 %v853_v62 }
 0x44a   : > { %v1915_v0 = vpop.eup %1914 }
 0x44b   : > { %1704 = vmatmul.mubr.msk.f32.vlgmr.msra.gmra.mrb[10].mxu1 %vm622_vm14, %v1915_v0 }
 0x44c   : > { %1806 = vmatpush3.bf16.msra.mxu1 %v2168_v13  ;;  %1725 = vmatprep.mubr.msk.f32.mxu1 %vm1998_vm0, %v1990_v9 }
 0x44d   : > { %1807 = vmatprep.subr.bf16.mxu1 %v1999_v12 }
 0x450   : > { %1809 = vmatpush3.bf16.msra.mxu1 %v2196_v37 }
 0x451   : > { %1816 = vmatprep.subr.bf16.mxu1 %v1999_v12 }
 0x51e   : > { %v924_v2 = vpop.f32.mrb[10].mxu1 }
 0x51f   : > { %v928_v3 = vadd.f32 %v924_v2, %v681_v1  ;;  %v1705_v4 = vpop.f32.mrb[11].mxu1 }
 0x521   : > { %1916 = vtanh.f32 %v928_v3 }
 0x52b   : > { %v1917_v5 = vpop.eup %1916 }
 0x52c   : > { %1715 = vmatmul.mubr.msk.f32.vlgmr.msra.gmra.mrb[14].mxu0 %vm622_vm14, %v1917_v5 }
 0x52d   : > { %1812 = vmatpush3.bf16.msra.mxu0 %v2168_v13  ;;  %1736 = vmatprep.mubr.msk.f32.mxu0 %vm1998_vm0, %v1990_v9 }
 0x52e   : > { %1813 = vmatprep.subr.bf16.mxu0 %v1999_v12 }
 0x531   : > { %1815 = vmatpush3.bf16.msra.mxu0 %v2196_v37 }
 0x532   : > { %1822 = vmatprep.subr.bf16.mxu0 %v1999_v12 }
 0x5ff   : > { %v999_v7 = vpop.f32.mrb[14].mxu0 }
 0x600   : > { %v1003_v8 = vadd.f32 %v999_v7, %v686_v6  ;;  %v1716_v10 = vpop.f32.mrb[15].mxu0 }
 0x602   : > { %1918 = vtanh.f32 %v1003_v8 }
 0x60c   : > { %v1919_v11 = vpop.eup %1918 }
 0x60d   : > { %1726 = vmatmul.mubr.msk.f32.vlgmr.msra.gmra.mrb[12].mxu1 %vm622_vm14, %v1919_v11 }
 0x60e   : > { %1818 = vmatpush3.bf16.msra.mxu1 %v2168_v13  ;;  %1747 = vmatprep.mubr.msk.f32.mxu1 %vm1998_vm0, %v1990_v9  ;;  %v694_v13 = vadd.f32 %v1671_v56, %v2205_v38 }
 0x60f   : > { %1819 = vmatprep.subr.bf16.mxu1 %v1999_v12 }
 0x612   : > { %1821 = vmatpush3.bf16.msra.mxu1 %v2196_v37  ;;  %v1244_v37 = vld [vmem:[%s2330_s3 + $0x58] sm:$0xff] }
 0x613   : > { %1834 = vmatprep.subr.bf16.mxu1 %v1999_v12 }
 0x6e0   : > { %v1074_v15 = vpop.f32.mrb[12].mxu1 }
 0x6e1   : > { %v1078_v16 = vadd.f32 %v1074_v15, %v689_v14  ;;  %v1727_v17 = vpop.f32.mrb[13].mxu1 }
 0x6e3   : > { %1920 = vtanh.f32 %v1078_v16 }
 0x6ed   : > { %v1921_v18 = vpop.eup %1920 }
 0x6ee   : > { %1737 = vmatmul.mubr.msk.f32.vlgmr.msra.gmra.mrb[16].mxu0 %vm622_vm14, %v1921_v18 }
 0x6ef   : > { %1766 = vmatprep.mubr.msk.f32.mxu0 %vm1998_vm0, %v1990_v9  ;;  %1824 = vmatpush3.bf16.msra.mxu0 %v1823_v26 }
 0x6f0   : > { %1825 = vmatprep.subr.bf16.mxu0 %v1999_v12 }
 0x6f3   : > { %1827 = vmatpush3.bf16.msra.mxu0 %v1826_v28 }
 0x6f4   : > { %1828 = vmatprep.subr.bf16.mxu0 %v1999_v12 }
 0x6f7   : > { %1830 = vmatpush3.bf16.msra.mxu0 %v1829_v33 }
 0x6f8   : > { %1831 = vmatprep.subr.bf16.mxu0 %v1999_v12 }
 0x7c1   : > { %v1149_v19 = vpop.f32.mrb[16].mxu0 }
 0x7c2   : > { %v1153_v20 = vadd.f32 %v1149_v19, %v694_v13  ;;  %v1738_v21 = vpop.f32.mrb[17].mxu0 }
 0x7c4   : > { %1922 = vtanh.f32 %v1153_v20 }
 0x7ce   : > { %v1923_v22 = vpop.eup %1922 }
 0x7cf   : > { %1748 = vmatmul.mubr.msk.f32.vlgmr.msra.gmra.mrb[14].mxu1 %vm622_vm14, %v1923_v22 }
 0x7d0   : > { %1777 = vmatprep.mubr.msk.f32.mxu1 %vm1998_vm0, %v1990_v9  ;;  %v697_v9 = vadd.f32 %v2227_v58, %v2205_v38  ;;  %v1832_v38 = vpack.c.bf16 %v1244_v37, %v1243_v36  ;;  %1836 = vmatpush3.bf16.msra.mxu1 %v1835_v41  ;;  %vm1235_vm0 = vcmask 523520  }
 0x7d1   : > { %1837 = vmatprep.subr.bf16.mxu1 %v1999_v12  ;;  %v1559_v12 = vld [vmem:[%s2330_s3 + $0x88] ss:$0 sm:$0xff] }
 0x7d2   : > { %1833 = vmatpush3.bf16.msra.mxu0 %v1832_v38 }
 0x7d4   : > { %1839 = vmatpush3.bf16.msra.mxu1 %v1838_v47 }
 0x8a2   : > { %v1224_v31 = vpop.f32.mrb[14].mxu1 }
 0x8a3   : > { %v1228_v34 = vadd.f32 %v1224_v31, %v697_v9  ;;  %v1749_v35 = vpop.f32.mrb[15].mxu1 }
 0x8a5   : > { %1924 = vtanh.f32 %v1228_v34 }
 0x8af   : > { %v1925_v42 = vpop.eup %1924 }
 0x8b0   : > { %1232 = vrot.lane.b32.xlu1 %v1925_v42, %s2000_s20 }
 0x922   : > { %v1233_v43 = vpop.permute.xlu1 %1232 }
 0x923   : > { %1236 = vst.msk [vmem:[#allocation2] sm:$0xff] %vm1235_vm0, %v1233_v43 }
 0x92a   : > { %v1246_v44 = vld [vmem:[#allocation2] sm:$0xff] }
 0x92b   : > { %1767 = vmatmul.mubr.msk.f32.vlgmr.msra.gmra.mrb[18].mxu0 %vm384_vm5, %v1246_v44 }
 0x9fe   : > { %v1320_v48 = vpop.f32.mrb[18].mxu0 }
 0x9ff   : > { %v1321_v49 = vadd.f32 %v1559_v12, %v1320_v48  ;;  %v1768_v50 = vpop.f32.mrb[19].mxu0 }
 0xa01   : > { %1778 = vmatmul.mubr.msk.f32.vlgmr.msra.gmra.mrb[16].mxu1 %vm622_vm14, %v1321_v49 }
 0xad4   : > { %v1402_v52 = vpop.f32.mrb[16].mxu1 }
 0xad5   : > { %v1403_v53 = vadd.f32 %v1561_v51, %v1402_v52  ;;  %v1779_v54 = vpop.f32.mrb[17].mxu1 }
 0xad7   : > { %v1407_v55 = vsel %vm1406_vm4, %v1403_v53, -1e+30 }
 0xad8   : > { %1408 = vmax.xlane.f32.xlu0 %v1407_v55 }
 0xb65   : > { %v1409_v56 = vpop.xlane.xlu0 %1408 }
 0xb66   : > { %v1410_v57 = vsub.f32 %v1403_v53, %v1409_v56 }
 0xb68   : > { %v1411_v58 = vmul.f32 1.442695, %v1410_v57 }
 0xb6a   : > { %1926 = vpow2.f32 %v1411_v58 }
 0xb74   : > { %v1927_v59 = vpop.eup %1926 }
 0xb75   : > { %v1413_v60 = vsel %vm1406_vm4, %v1927_v59, 0.0 }
 0xb76   : > { %1414 = vadd.xlane.f32.xlu1 %v1413_v60 }
 0xc03   : > { %v1415_v61 = vpop.xlane.xlu1 %1414 }
 0xc04   : > { %1928 = vlog2.f32 %v1415_v61 }
 0xc0e   : > { %v1929_v62 = vpop.eup %1928 }
 0xc0f   : > { %v1417_v63 = vmul.f32 0.6931472, %v1929_v62 }
 0xc11   : > { %v1418_v0 = vadd.f32 %v1417_v63, %v1409_v56 }
 0xc13   : > { %v1419_v32 = vsub.f32 %v1403_v53, %v1418_v0 }
 0xc15   : > { %1420 = vst [vmem:[%s289_s5] sm:$0xff] %v1419_v32 }
 0xc16 PF: > { %p12_p11 = scmp.ge.s32.totalorder %s2045_s19, 4   ;;  %s2341_s15 = smov %s1980_s16 }
 0xc17   : > { %s2342_s16 = smov %s2055_s22  ;;  %s2343_s17 = smov %s2045_s19 }
 0xc18   :  { %14 = sbr.rel (!%p12_p11) target bundleno = 2 (0x2), region = 117 }
 0xc1f   :  { %1440 = vsyncpa [#allocation5], 1 }
 0xc20   :  { %1442 = vsyncpa [#allocation5 + $0x1], 1 }

</bundles_post_ra>
